<compile_context>
chip_gen: v5e
topology: v5e:2x2
jax: 0.10.0
libtpu: 0.0.40
codegen_flags: <defaults>
</compile_context>

<pallas_src>
import functools

import jax
import jax.numpy as jnp
from jax.experimental import pallas as pl
from jax.experimental.pallas import tpu as pltpu


def _round_up(x, m):
    return (x + m - 1) // m * m


def _cdiv(a, b):
    return -(-a // b)


def _vmem_budget_bytes():
    """Generation-aware VMEM limit for the Mosaic compiler."""
    try:
        cap = int(pltpu.get_tpu_info().vmem_capacity_bytes)
    except Exception:  # pragma: no cover - conservative fallback
        return 48 * 1024 * 1024, False
    big = cap >= 96 * 1024 * 1024
    limit = min(100 * 1024 * 1024, cap - 12 * 1024 * 1024)
    return int(limit), big


def _mlp_kernel(*refs, n_layers, apply_acts):
    # refs layout: x_ref, w0, b0, w1, b1, ..., w{L-1}, b{L-1}, o_ref
    x_ref = refs[0]
    o_ref = refs[1 + 2 * n_layers]

    h = x_ref[...]                                    # (tm, K0p) f32
    for i in range(n_layers):
        w_ref = refs[1 + 2 * i]                       # (Kip, Nip) bf16, resident
        b_ref = refs[2 + 2 * i]                       # (1,   Nip) f32,  resident
        # bf16 x bf16 MXU matmul with f32 accumulation; bias + ReLU fused on
        # the f32 accumulator.  Zero-padded weight rows/cols keep padded lanes
        # exactly 0 through the bias/ReLU chaining.
        acc = jnp.dot(h.astype(jnp.bfloat16), w_ref[...],
                      preferred_element_type=jnp.float32)
        acc = acc + b_ref[...]
        if apply_acts[i]:
            acc = jnp.maximum(acc, 0.0)               # ReLU
        h = acc
    o_ref[...] = h.astype(o_ref.dtype)


def init_mlp_params(key, num_layers, in_dim, hid_dim, out_dim):
    """Init mimicking torch.nn.Linear default (U(-1/sqrt(fan_in), +)).

    Weights are transposed to (in, out) layout, zero-padded to (128, 128)
    multiples and cast to bf16 ONCE here; biases are padded and kept f32.
    Returns (params, dims) where dims are the true (unpadded) layer widths.
    """
    dims = (in_dim,) + (hid_dim,) * num_layers + (out_dim,)
    params = []
    for i in range(len(dims) - 1):
        fan_in, fan_out = dims[i], dims[i + 1]
        key, kw, kb = jax.random.split(key, 3)
        bound = 1.0 / (fan_in ** 0.5)
        w_torch = jax.random.uniform(kw, (fan_out, fan_in), jnp.float32,
                                     minval=-bound, maxval=bound)
        b = jax.random.uniform(kb, (fan_out,), jnp.float32,
                               minval=-bound, maxval=bound)
        Kp = _round_up(fan_in, 128)
        Np = _round_up(fan_out, 128)
        w_pad = (jnp.zeros((Kp, Np), jnp.float32)
                 .at[:fan_in, :fan_out].set(w_torch.T)).astype(jnp.bfloat16)
        b_pad = jnp.zeros((1, Np), jnp.float32).at[0, :fan_out].set(b)
        params.append((w_pad, b_pad))
    return params, dims


@functools.partial(jax.jit, static_argnames=("dims", "use_act"))
def mlp_forward(params, x, dims, use_act=True):
    """Fused MLP forward.

    params: list of (w_pad bf16 (Kp,Np), b_pad f32 (1,Np)), already padded.
    x: (M, in_dim) float32.  dims: true layer widths (in, hid..., out).
    """
    n_layers = len(params)
    M, K0 = x.shape
    assert K0 == dims[0]

    vmem_limit, big_vmem = _vmem_budget_bytes()

    # --- Batch tiling -------------------------------------------------------
    # Round M up only to the sublane multiple (8), then pick tm so that
    # (a) tm <= cap (512 on 128-MiB parts, 256 on v7x), and
    # (b) there are >= 2 tiles whenever M allows it (v7x megacore sharding).
    tm_cap = 512 if big_vmem else 256
    Mp = _round_up(M, 8)
    n_tiles = max(_cdiv(Mp, tm_cap), 2 if Mp >= 16 else 1)
    tm = _round_up(_cdiv(Mp, n_tiles), 8)
    Mp = n_tiles * tm

    K0p = params[0][0].shape[0]
    NLp = params[-1][0].shape[1]

    # Pad the activation only if actually needed (once, at the MLP boundary).
    if Mp == M and K0p == K0:
        x_p = x
    else:
        x_p = jnp.pad(x, ((0, Mp - M), (0, K0p - K0)))

    apply_acts = tuple(use_act and (i < n_layers - 1) for i in range(n_layers))

    in_specs = [pl.BlockSpec((tm, K0p), lambda i: (i, 0))]
    flat_inputs = [x_p]
    flops = 0
    bytes_accessed = x_p.size * 4 + Mp * NLp * 4
    for (w, b) in params:
        Kp, Np = w.shape
        # Constant index_map -> DMA'd once, stays VMEM-resident across the
        # batch grid.  Buffered(1): no point double-buffering a constant block.
        in_specs.append(pl.BlockSpec((Kp, Np), lambda i: (0, 0),
                                     pipeline_mode=pl.Buffered(1)))
        in_specs.append(pl.BlockSpec((1, Np), lambda i: (0, 0),
                                     pipeline_mode=pl.Buffered(1)))
        flat_inputs += [w, b]
        flops += 2 * Mp * Kp * Np
        bytes_accessed += Kp * Np * 2 + Np * 4

    out = pl.pallas_call(
        functools.partial(_mlp_kernel, n_layers=n_layers, apply_acts=apply_acts),
        out_shape=jax.ShapeDtypeStruct((Mp, NLp), jnp.float32),
        grid=(n_tiles,),
        in_specs=in_specs,
        out_specs=pl.BlockSpec((tm, NLp), lambda i: (i, 0)),
        compiler_params=pltpu.CompilerParams(
            dimension_semantics=("parallel",),      # shard batch tiles across TCs
            vmem_limit_bytes=vmem_limit,            # generation-aware budget
        ),
        cost_estimate=pl.CostEstimate(
            flops=flops, transcendentals=0, bytes_accessed=bytes_accessed),
    )(*flat_inputs)

    # Slice padding away once at the boundary.
    return out[:M, :dims[-1]]


def mlp_reference(params, x, dims, use_act=True):
    """Pure-JAX reference mirroring the kernel's bf16-input / f32-accum math."""
    n_layers = len(params)
    h = x
    for i, (w_pad, b_pad) in enumerate(params):
        w = w_pad[:dims[i], :dims[i + 1]]            # already bf16
        b = b_pad[0, :dims[i + 1]]                   # f32
        h = jnp.dot(h.astype(jnp.bfloat16), w,
                    preferred_element_type=jnp.float32) + b
        if use_act and (i < n_layers - 1):
            h = jnp.maximum(h, 0.0)
    return h


if __name__ == "__main__":
    key = jax.random.PRNGKey(0)
    kx, kp = jax.random.split(key)

    # MLP(num_layers=2, in_dim=16, hid_dim=32, out_dim=8, act='relu'), batch=8.
    batch, in_dim, hid_dim, out_dim, num_layers = 8, 16, 32, 8, 2

    x = jax.random.normal(kx, (batch, in_dim), jnp.float32)
    params, dims = init_mlp_params(kp, num_layers, in_dim, hid_dim, out_dim)

    y = mlp_forward(params, x, dims, use_act=True)
    y = jax.block_until_ready(y)

    y_ref = mlp_reference(params, x, dims, use_act=True)
    assert y.shape == (batch, out_dim)
    # bf16 weight/input rounding (f32 accumulation) -> relaxed tolerance.
    assert jnp.allclose(y, y_ref, atol=5e-3, rtol=5e-3), "mismatch vs reference"

    print("KERNEL_OK")
</pallas_src>

<mosaic_0001>
module attributes {stable_mosaic.version = 11 : i64} {
  func.func @_mlp_kernel(%arg0: i32, %arg1: memref<8x128xf32, #tpu.memory_space<vmem>>, %arg2: memref<128x128xbf16, #tpu.memory_space<vmem>>, %arg3: memref<1x128xf32, #tpu.memory_space<vmem>>, %arg4: memref<128x128xbf16, #tpu.memory_space<vmem>>, %arg5: memref<1x128xf32, #tpu.memory_space<vmem>>, %arg6: memref<128x128xbf16, #tpu.memory_space<vmem>>, %arg7: memref<1x128xf32, #tpu.memory_space<vmem>>, %arg8: memref<8x128xf32, #tpu.memory_space<vmem>>) attributes {dimension_semantics = [#tpu.dimension_semantics<parallel>], iteration_bounds = array<i64: 1>, scalar_prefetch = 0 : i64, scratch_operands = 0 : i64, tpu.core_type = #tpu.core_type<tc>, window_params = [{transform_indices = @transform_0, window_bounds = array<i64: 8, 128>}, {pipeline_mode = #tpu.pipeline_mode<synchronous>, transform_indices = @transform_1, window_bounds = array<i64: 128, 128>}, {pipeline_mode = #tpu.pipeline_mode<synchronous>, transform_indices = @transform_2, window_bounds = array<i64: 1, 128>}, {pipeline_mode = #tpu.pipeline_mode<synchronous>, transform_indices = @transform_3, window_bounds = array<i64: 128, 128>}, {pipeline_mode = #tpu.pipeline_mode<synchronous>, transform_indices = @transform_4, window_bounds = array<i64: 1, 128>}, {pipeline_mode = #tpu.pipeline_mode<synchronous>, transform_indices = @transform_5, window_bounds = array<i64: 128, 128>}, {pipeline_mode = #tpu.pipeline_mode<synchronous>, transform_indices = @transform_6, window_bounds = array<i64: 1, 128>}, {transform_indices = @transform_7, window_bounds = array<i64: 8, 128>}]} {
    %c0 = arith.constant 0 : index
    %c0_0 = arith.constant 0 : index
    %0 = vector.load %arg1[%c0, %c0_0] : memref<8x128xf32, #tpu.memory_space<vmem>>, vector<8x128xf32>
    %1 = arith.truncf %0 : vector<8x128xf32> to vector<8x128xbf16>
    %c0_1 = arith.constant 0 : index
    %c0_2 = arith.constant 0 : index
    %2 = vector.load %arg2[%c0_1, %c0_2] : memref<128x128xbf16, #tpu.memory_space<vmem>>, vector<128x128xbf16>
    %cst = arith.constant dense<0.000000e+00> : vector<8x128xf32>
    %3 = tpu.matmul %1, %2, %cst {dimension_numbers = #tpu.dot_dimension_numbers<[1], [0], [0], [1], [0, 0, 1, 1], [], []>} : vector<8x128xbf16>, vector<128x128xbf16>, vector<8x128xf32> -> vector<8x128xf32>
    %c0_3 = arith.constant 0 : index
    %c0_4 = arith.constant 0 : index
    %4 = vector.load %arg3[%c0_3, %c0_4] : memref<1x128xf32, #tpu.memory_space<vmem>>, vector<1x128xf32>
    %5 = vector.broadcast %4 : vector<1x128xf32> to vector<8x128xf32>
    %6 = arith.addf %3, %5 : vector<8x128xf32>
    %cst_5 = arith.constant 0.000000e+00 : f32
    %7 = vector.broadcast %cst_5 : f32 to vector<8x128xf32>
    %8 = arith.maximumf %6, %7 : vector<8x128xf32>
    %9 = arith.truncf %8 : vector<8x128xf32> to vector<8x128xbf16>
    %c0_6 = arith.constant 0 : index
    %c0_7 = arith.constant 0 : index
    %10 = vector.load %arg4[%c0_6, %c0_7] : memref<128x128xbf16, #tpu.memory_space<vmem>>, vector<128x128xbf16>
    %cst_8 = arith.constant dense<0.000000e+00> : vector<8x128xf32>
    %11 = tpu.matmul %9, %10, %cst_8 {dimension_numbers = #tpu.dot_dimension_numbers<[1], [0], [0], [1], [0, 0, 1, 1], [], []>} : vector<8x128xbf16>, vector<128x128xbf16>, vector<8x128xf32> -> vector<8x128xf32>
    %c0_9 = arith.constant 0 : index
    %c0_10 = arith.constant 0 : index
    %12 = vector.load %arg5[%c0_9, %c0_10] : memref<1x128xf32, #tpu.memory_space<vmem>>, vector<1x128xf32>
    %13 = vector.broadcast %12 : vector<1x128xf32> to vector<8x128xf32>
    %14 = arith.addf %11, %13 : vector<8x128xf32>
    %cst_11 = arith.constant 0.000000e+00 : f32
    %15 = vector.broadcast %cst_11 : f32 to vector<8x128xf32>
    %16 = arith.maximumf %14, %15 : vector<8x128xf32>
    %17 = arith.truncf %16 : vector<8x128xf32> to vector<8x128xbf16>
    %c0_12 = arith.constant 0 : index
    %c0_13 = arith.constant 0 : index
    %18 = vector.load %arg6[%c0_12, %c0_13] : memref<128x128xbf16, #tpu.memory_space<vmem>>, vector<128x128xbf16>
    %cst_14 = arith.constant dense<0.000000e+00> : vector<8x128xf32>
    %19 = tpu.matmul %17, %18, %cst_14 {dimension_numbers = #tpu.dot_dimension_numbers<[1], [0], [0], [1], [0, 0, 1, 1], [], []>} : vector<8x128xbf16>, vector<128x128xbf16>, vector<8x128xf32> -> vector<8x128xf32>
    %c0_15 = arith.constant 0 : index
    %c0_16 = arith.constant 0 : index
    %20 = vector.load %arg7[%c0_15, %c0_16] : memref<1x128xf32, #tpu.memory_space<vmem>>, vector<1x128xf32>
    %21 = vector.broadcast %20 : vector<1x128xf32> to vector<8x128xf32>
    %22 = arith.addf %19, %21 : vector<8x128xf32>
    %c0_17 = arith.constant 0 : index
    %c0_18 = arith.constant 0 : index
    %23 = vector.load %arg8[%c0_17, %c0_18] : memref<8x128xf32, #tpu.memory_space<vmem>>, vector<8x128xf32>
    tpu.vector_store %arg8[%c0_17, %c0_18], %22 {strides = array<i32>} : memref<8x128xf32, #tpu.memory_space<vmem>>, vector<8x128xf32>,
    return
  }
  func.func @transform_0(%arg0: i32) -> (i32, i32) {
    %c0_i32 = arith.constant 0 : i32
    %c0_i32_0 = arith.constant 0 : i32
    return %arg0, %c0_i32 : i32, i32
  }
  func.func @transform_1(%arg0: i32) -> (i32, i32) {
    %c0_i32 = arith.constant 0 : i32
    %c0_i32_0 = arith.constant 0 : i32
    %c0_i32_1 = arith.constant 0 : i32
    return %c0_i32, %c0_i32_0 : i32, i32
  }
  func.func @transform_2(%arg0: i32) -> (i32, i32) {
    %c0_i32 = arith.constant 0 : i32
    %c0_i32_0 = arith.constant 0 : i32
    %c0_i32_1 = arith.constant 0 : i32
    return %c0_i32, %c0_i32_0 : i32, i32
  }
  func.func @transform_3(%arg0: i32) -> (i32, i32) {
    %c0_i32 = arith.constant 0 : i32
    %c0_i32_0 = arith.constant 0 : i32
    %c0_i32_1 = arith.constant 0 : i32
    return %c0_i32, %c0_i32_0 : i32, i32
  }
  func.func @transform_4(%arg0: i32) -> (i32, i32) {
    %c0_i32 = arith.constant 0 : i32
    %c0_i32_0 = arith.constant 0 : i32
    %c0_i32_1 = arith.constant 0 : i32
    return %c0_i32, %c0_i32_0 : i32, i32
  }
  func.func @transform_5(%arg0: i32) -> (i32, i32) {
    %c0_i32 = arith.constant 0 : i32
    %c0_i32_0 = arith.constant 0 : i32
    %c0_i32_1 = arith.constant 0 : i32
    return %c0_i32, %c0_i32_0 : i32, i32
  }
  func.func @transform_6(%arg0: i32) -> (i32, i32) {
    %c0_i32 = arith.constant 0 : i32
    %c0_i32_0 = arith.constant 0 : i32
    %c0_i32_1 = arith.constant 0 : i32
    return %c0_i32, %c0_i32_0 : i32, i32
  }
  func.func @transform_7(%arg0: i32) -> (i32, i32) {
    %c0_i32 = arith.constant 0 : i32
    %c0_i32_0 = arith.constant 0 : i32
    return %arg0, %c0_i32 : i32, i32
  }
}

</mosaic_0001>

<bundles_post_ra>
// kernel: mlp_forward.1
= control target key start
LH: loop header
LB: loop body
LE: loop exit
PB: predicated region body
PF: predicated region fallthrough
CT: control target
= control target key end

     0   :  { %12 = vsyncpa [#allocation3], 0  ;;  %s643_s0 = inlined_call_operand.vmem [shape: f32[8,128], index: 0, kind: input, shape index: {}]   ;;  %s644_s1 = inlined_call_operand.hbm [shape: bf16[128,128], index: 1, kind: input, shape index: {}]   ;;  %s645_s2 = inlined_call_operand.vmem [shape: f32[1,128], index: 2, kind: input, shape index: {}]   ;;  %s646_s3 = inlined_call_operand.hbm [shape: bf16[128,128], index: 3, kind: input, shape index: {}]   ;;  %s647_s4 = inlined_call_operand.vmem [shape: f32[1,128], index: 4, kind: input, shape index: {}]   ;;  %s648_s5 = inlined_call_operand.hbm [shape: bf16[128,128], index: 5, kind: input, shape index: {}]   ;;  %s649_s6 = inlined_call_operand.vmem [shape: f32[1,128], index: 6, kind: input, shape index: {}]   ;;  %s650_s7 = inlined_call_operand.hbm [shape: f32[8,128], index: 7, kind: output, shape index: {}]  }
   0x1   :  { %13 = vsyncpa [#allocation6], 0 }
   0x2   :  { %14 = vsyncpa [#allocation4], 0  ;;  %s36_s26 = sshll.u32 %s646_s3, 4  ;;  %s573_s27 = smov [#allocation5]   ;;  %s37_s26 = int_to_ptr.hbm [resolvable:$true] %s36_s26 }
   0x3   :  { %s38_s28 = sshll.u32 %s573_s27, 4  ;;  %s21_s8 = sshll.u32 %s644_s1, 4  ;;  %s39_s28 = int_to_ptr.vmem [resolvable:$true] %s38_s28  ;;  %s22_s8 = int_to_ptr.hbm [resolvable:$true] %s21_s8 }
   0x4   :  { %s574_s9 = smov 64   ;;  %s575_s10 = smov 4  }
   0x5   :  { %44 = dma.hbm_to_vmem [thread:$0]  %s37_s26, 1024, %s39_s28, [#allocation6], %s574_s9, %s574_s9, %s575_s10  }
   0x6   :  { %s576_s11 = smov [#allocation2]   ;;  %s51_s15 = sshll.u32 %s648_s5, 4  ;;  %s52_s15 = int_to_ptr.hbm [resolvable:$true] %s51_s15 }
   0x7   :  { %s23_s12 = sshll.u32 %s576_s11, 4  ;;  %s577_s3 = smov [#allocation7]   ;;  %s24_s12 = int_to_ptr.vmem [resolvable:$true] %s23_s12 }
   0x8   :  { %29 = dma.hbm_to_vmem [thread:$0]  %s22_s8, 1024, %s24_s12, [#allocation3], %s574_s9, %s574_s9, %s575_s10  }
   0x9   :  { %s53_s16 = sshll.u32 %s577_s3, 4  ;;  %s54_s16 = int_to_ptr.vmem [resolvable:$true] %s53_s16 }
   0xa   :  { %59 = dma.hbm_to_vmem [thread:$0]  %s52_s15, 1024, %s54_s16, [#allocation6], %s574_s9, %s574_s9, %s575_s10  }
   0xb   :  { %567 = dma.done.wait [#allocation3], 1024  }
   0xc   :  { %568 = vsyncadd [#allocation3], 4294966272 }
   0xd   :  { %569 = dma.done.wait [#allocation6], 2048  }
   0xe   :  { %570 = vsyncadd [#allocation6], 4294965248  ;;  %v445_v0 = vld [vmem:[#allocation2 + $0x38] sm:$0xff]  ;;  %v444_v1 = vld [vmem:[#allocation2 + $0x30] sm:$0xff]  ;;  %s578_s21 = smov [#allocation8]   ;;  %s331_s25 = sshll.u32 %s650_s7, 4  ;;  %s332_s25 = int_to_ptr.hbm [resolvable:$true] %s331_s25 }
   0xf   :  { %144 = vmatpush.bf16.msra.mxu0 %v445_v0  ;;  %v453_v2 = vld [vmem:[#allocation5 + $0x38] sm:$0xff]  ;;  %v452_v3 = vld [vmem:[#allocation5 + $0x30] sm:$0xff]  ;;  %v443_v4 = vld [vmem:[#allocation2 + $0x28] sm:$0xff]  ;;  %s329_s22 = sshll.u32 %s578_s21, 4  ;;  %s330_s22 = int_to_ptr.vmem [resolvable:$true] %s329_s22 }
  0x10   :  { %227 = vmatpush.bf16.msra.mxu1 %v453_v2  ;;  %v451_v5 = vld [vmem:[#allocation5 + $0x28] sm:$0xff]  ;;  %v442_v6 = vld [vmem:[#allocation2 + $0x20] sm:$0xff]  ;;  %v441_v8 = vld [vmem:[#allocation2 + $0x18] sm:$0xff] }
  0x11   :  { %v450_v7 = vld [vmem:[#allocation5 + $0x20] sm:$0xff]  ;;  %v449_v9 = vld [vmem:[#allocation5 + $0x18] sm:$0xff]  ;;  %v440_v10 = vld [vmem:[#allocation2 + $0x10] sm:$0xff] }
  0x12   :  { %v448_v11 = vld [vmem:[#allocation5 + $0x10] sm:$0xff]  ;;  %v439_v12 = vld [vmem:[#allocation2 + $0x8] sm:$0xff]  ;;  %v438_v13 = vld [vmem:[#allocation2] sm:$0xff] }
  0x13   :  { %145 = vmatpush.bf16.msra.mxu0 %v444_v1  ;;  %v74_v14 = vld [vmem:[%s643_s0] sm:$0xff]  ;;  %v447_v16 = vld [vmem:[#allocation5 + $0x8] sm:$0xff]  ;;  %v461_v18 = vld [vmem:[#allocation7 + $0x38] sm:$0xff] }
  0x14   :  { %228 = vmatpush.bf16.msra.mxu1 %v452_v3  ;;  %v75_v15 = vpack.c.bf16 %v74_v14, %v74_v14  ;;  %v446_v17 = vld [vmem:[#allocation5] sm:$0xff]  ;;  %310 = vmatpush.bf16.msra.mxu2 %v461_v18  ;;  %v460_v19 = vld [vmem:[#allocation7 + $0x30] sm:$0xff]  ;;  %v459_v20 = vld [vmem:[#allocation7 + $0x28] sm:$0xff] }
  0x15   :  { %v458_v21 = vld [vmem:[#allocation7 + $0x20] sm:$0xff]  ;;  %v457_v22 = vld [vmem:[#allocation7 + $0x18] sm:$0xff]  ;;  %v456_v23 = vld [vmem:[#allocation7 + $0x10] sm:$0xff] }
  0x16   :  { %v468_v24 = vld [vmem:[%s645_s2] ss:$0 sm:$0xff]  ;;  %v455_v30 = vld [vmem:[#allocation7 + $0x8] sm:$0xff] }
  0x17   :  { %146 = vmatpush.bf16.msra.mxu0 %v443_v4  ;;  %v454_v31 = vld [vmem:[#allocation7] sm:$0xff] }
  0x18   :  { %229 = vmatpush.bf16.msra.mxu1 %v451_v5  ;;  %311 = vmatpush.bf16.msra.mxu2 %v460_v19  ;;  %v469_v32 = vld [vmem:[%s647_s4] ss:$0 sm:$0xff] }
  0x19   :  { %v470_v38 = vld [vmem:[%s649_s6] ss:$0 sm:$0xff] }
  0x1b   :  { %147 = vmatpush.bf16.msra.mxu0 %v442_v6 }
  0x1c   :  { %230 = vmatpush.bf16.msra.mxu1 %v450_v7  ;;  %312 = vmatpush.bf16.msra.mxu2 %v459_v20 }
  0x1f   :  { %148 = vmatpush.bf16.msra.mxu0 %v441_v8 }
  0x20   :  { %231 = vmatpush.bf16.msra.mxu1 %v449_v9  ;;  %313 = vmatpush.bf16.msra.mxu2 %v458_v21 }
  0x23   :  { %149 = vmatpush.bf16.msra.mxu0 %v440_v10 }
  0x24   :  { %232 = vmatpush.bf16.msra.mxu1 %v448_v11  ;;  %314 = vmatpush.bf16.msra.mxu2 %v457_v22 }
  0x27   :  { %150 = vmatpush.bf16.msra.mxu0 %v439_v12 }
  0x28   :  { %233 = vmatpush.bf16.msra.mxu1 %v447_v16  ;;  %315 = vmatpush.bf16.msra.mxu2 %v456_v23 }
  0x2b   :  { %151 = vmatpush.bf16.msra.mxu0 %v438_v13 }
  0x2c   :  { %234 = vmatpush.bf16.msra.mxu1 %v446_v17  ;;  %316 = vmatpush.bf16.msra.mxu2 %v455_v30 }
  0x2e   :  { %152 = vmatmul.bf16.vlgmr.msra.gmra.mxu0 %v75_v15 }
  0x30   :  { %317 = vmatpush.bf16.msra.mxu2 %v454_v31 }
  0xab   :  { %v153_v25 = vpop.f32.mrf.mxu0 }
  0xac   :  { %v154_v26 = vadd.f32 %v468_v24, %v153_v25 }
  0xae   :  { %v157_v27 = vmax.f32 %v154_v26, 0.0 }
  0xb0   :  { %v158_v28 = vpack.c.bf16 %v157_v27, %v157_v27 }
  0xb2   :  { %235 = vmatmul.bf16.vlgmr.msra.gmra.mxu1 %v158_v28 }
  0xb3   :  { %v155_v29 = vpop.f32.mrf.mxu0 }
 0x12f   :  { %v236_v33 = vpop.f32.mrf.mxu1 }
 0x130   :  { %v237_v34 = vadd.f32 %v469_v32, %v236_v33 }
 0x132   :  { %v240_v35 = vmax.f32 %v237_v34, 0.0 }
 0x134   :  { %v241_v36 = vpack.c.bf16 %v240_v35, %v240_v35 }
 0x136   :  { %318 = vmatmul.bf16.vlgmr.msra.gmra.mxu2 %v241_v36 }
 0x137   :  { %v238_v37 = vpop.f32.mrf.mxu1 }
 0x1b9   :  { %v319_v39 = vpop.f32.mrf.mxu2 }
 0x1ba   :  { %v320_v40 = vadd.f32 %v470_v38, %v319_v39 }
 0x1bc   :  { %323 = vst [vmem:[#allocation8] sm:$0xff] %v320_v40 }
 0x1bd   :  { %334 = dma.vmem_to_hbm [thread:$0]  %s330_s22, 128, %s332_s25, [#allocation4]  }
 0x1c1   :  { %v321_v41 = vpop.f32.mrf.mxu2 }
 0x1c2   :  { %571 = dma.done.wait [#allocation4], 128  }
 0x1c3   :  { %572 = vsyncadd [#allocation4], 4294967168 }
 0x1c4   :  { %339 = vsyncpa [#allocation3], 1 }
 0x1c5   :  { %340 = vsyncpa [#allocation6], 1 }
 0x1c6   :  { %341 = vsyncpa [#allocation4], 1 }

</bundles_post_ra>
